<compile_context>
chip_gen: v7x
topology: tpu7x:2x2x1
jax: 0.10.0
libtpu: 0.0.40
codegen_flags: <defaults>
</compile_context>

<pallas_src>
import functools

import jax
import jax.numpy as jnp
from jax.experimental import pallas as pl
from jax.experimental.pallas import tpu as pltpu

SUBLANE = 8                                # f32 sublane count (batch-tile alignment)
_SINGLE_BUFFER_WEIGHT_BYTES = 4 << 20      # single-buffer resident weights above this


def _round_up(x, m):
    return (x + m - 1) // m * m


def ensemble_head_kernel(x_ref, w1_ref, b1_ref, w2_ref, b2_ref, o_ref):
    # fc1: (TB, D) @ (D, D) + (1, D); accumulate in f32 on the MXU.
    h = jnp.dot(x_ref[...], w1_ref[...], preferred_element_type=jnp.float32)
    h = h + b1_ref[...].astype(jnp.float32)
    h = jnp.maximum(h, 0.0)  # ReLU (VPU, f32)
    # fc2: (TB, D) @ (D, C) + (1, C).  Casting h to the weight dtype is a no-op
    # for f32 weights; with bf16 weights it intentionally narrows h.
    out = jnp.dot(h.astype(w2_ref.dtype), w2_ref[...],
                  preferred_element_type=jnp.float32)
    out = out + b2_ref[...].astype(jnp.float32)
    o_ref[...] = out.astype(o_ref.dtype)


def _resident_spec(shape, single_buffer):
    # Constant index_map -> block is DMA'd once and stays VMEM-resident.
    if single_buffer:
        # A never-changing block needs no double buffer; halves resident-weight
        # VMEM (matters for large D on v7x's 64 MiB VMEM).
        return pl.BlockSpec(shape, lambda i: (0, 0), pipeline_mode=pl.Buffered(1))
    return pl.BlockSpec(shape, lambda i: (0, 0))


@functools.partial(jax.jit, static_argnames=("tile_b",))
def ensemble_head(x, w1, b1, w2, b2, *, tile_b=512):
    """x: (B, D); w1: (D, D); b1: (1, D); w2: (D, C); b2: (1, C) -> (B, C)."""
    B, D = x.shape
    C = w2.shape[1]

    # Large batch tile (we are in the HBM/overhead-bound regime), but never
    # larger than the sublane-rounded batch so tiny batches don't over-allocate.
    tb = min(tile_b, _round_up(B, SUBLANE))
    grid = (pl.cdiv(B, tb),)  # ragged last block; OOB rows masked on writeback

    weight_bytes = sum(int(a.size) * a.dtype.itemsize for a in (w1, b1, w2, b2))
    single_buffer = weight_bytes > _SINGLE_BUFFER_WEIGHT_BYTES

    flops = 2 * B * D * (D + C)
    bytes_accessed = (B * D * x.dtype.itemsize      # x read
                      + weight_bytes                # params read once
                      + B * C * x.dtype.itemsize)   # output write

    return pl.pallas_call(
        ensemble_head_kernel,
        out_shape=jax.ShapeDtypeStruct((B, C), x.dtype),
        grid=grid,
        in_specs=[
            pl.BlockSpec((tb, D), lambda i: (i, 0)),   # x: tiled over batch
            _resident_spec((D, D), single_buffer),     # w1: resident
            _resident_spec((1, D), single_buffer),     # b1: resident
            _resident_spec((D, C), single_buffer),     # w2: resident
            _resident_spec((1, C), single_buffer),     # b2: resident
        ],
        out_specs=pl.BlockSpec((tb, C), lambda i: (i, 0)),
        compiler_params=pltpu.CompilerParams(
            dimension_semantics=("parallel",)),
        cost_estimate=pl.CostEstimate(
            flops=flops, transcendentals=0, bytes_accessed=bytes_accessed),
    )(x, w1, b1, w2, b2)


def init_params(key, num_predictor_models, num_of_classes, dtype=jnp.float32):
    """Deterministic init mirroring nn.Linear's default U(-1/sqrt(fan_in), +).

    PyTorch stores W as (out, in); we keep (in, out) so the kernel does x @ W.
    Pass dtype=jnp.bfloat16 on v6e/v7x to halve weight bytes (the kernel still
    accumulates in f32).
    """
    D = num_predictor_models * num_of_classes
    C = num_of_classes
    k1, k2, k3, k4 = jax.random.split(key, 4)
    bound = 1.0 / (D ** 0.5)
    w1 = jax.random.uniform(k1, (D, D), dtype, -bound, bound)
    b1 = jax.random.uniform(k2, (1, D), dtype, -bound, bound)
    w2 = jax.random.uniform(k3, (D, C), dtype, -bound, bound)
    b2 = jax.random.uniform(k4, (1, C), dtype, -bound, bound)
    return w1, b1, w2, b2


if __name__ == "__main__":
    num_predictor_models = 4
    num_of_classes = 8
    D = num_predictor_models * num_of_classes   # 32: stacked base-model logits
    C = num_of_classes

    key = jax.random.PRNGKey(0)
    kx, kp, kx2 = jax.random.split(key, 3)
    w1, b1, w2, b2 = init_params(kp, num_predictor_models, num_of_classes)

    # Small batch (shape the module implies: stacked base-model logits).
    B = 8
    x = jax.random.normal(kx, (B, D), jnp.float32)
    out = jax.block_until_ready(ensemble_head(x, w1, b1, w2, b2))
    ref = jnp.maximum(x @ w1 + b1, 0.0) @ w2 + b2
    assert out.shape == (B, C)
    assert jnp.allclose(out, ref, atol=1e-5, rtol=1e-5)

    # Larger, non-multiple batch to exercise the ragged-last-block grid path.
    B2 = 300
    x2 = jax.random.normal(kx2, (B2, D), jnp.float32)
    out2 = jax.block_until_ready(ensemble_head(x2, w1, b1, w2, b2))
    ref2 = jnp.maximum(x2 @ w1 + b1, 0.0) @ w2 + b2
    assert out2.shape == (B2, C)
    assert jnp.allclose(out2, ref2, atol=1e-4, rtol=1e-4)

    # bf16 path (recommended on v6e/v7x: halves the dominant HBM streams).
    xb = x2.astype(jnp.bfloat16)
    wb = tuple(p.astype(jnp.bfloat16) for p in (w1, b1, w2, b2))
    out_bf16 = jax.block_until_ready(ensemble_head(xb, *wb))
    assert out_bf16.shape == (B2, C)
    assert out_bf16.dtype == jnp.bfloat16
    assert jnp.allclose(out_bf16.astype(jnp.float32), ref2, atol=5e-2, rtol=5e-2)

    print("KERNEL_OK")
</pallas_src>

<mosaic_0001>
module attributes {stable_mosaic.version = 11 : i64} {
  func.func @ensemble_head_kernel(%arg0: i32, %arg1: memref<8x32xf32, #tpu.memory_space<vmem>>, %arg2: memref<32x32xf32, #tpu.memory_space<vmem>>, %arg3: memref<1x32xf32, #tpu.memory_space<vmem>>, %arg4: memref<32x8xf32, #tpu.memory_space<vmem>>, %arg5: memref<1x8xf32, #tpu.memory_space<vmem>>, %arg6: memref<8x8xf32, #tpu.memory_space<vmem>>) attributes {dimension_semantics = [#tpu.dimension_semantics<parallel>], iteration_bounds = array<i64: 1>, scalar_prefetch = 0 : i64, scratch_operands = 0 : i64, tpu.core_type = #tpu.core_type<tc>, window_params = [{transform_indices = @transform_0, window_bounds = array<i64: 8, 32>}, {pipeline_mode = #tpu.pipeline_mode<synchronous>, transform_indices = @transform_1, window_bounds = array<i64: 32, 32>}, {pipeline_mode = #tpu.pipeline_mode<synchronous>, transform_indices = @transform_2, window_bounds = array<i64: 1, 32>}, {pipeline_mode = #tpu.pipeline_mode<synchronous>, transform_indices = @transform_3, window_bounds = array<i64: 32, 8>}, {pipeline_mode = #tpu.pipeline_mode<synchronous>, transform_indices = @transform_4, window_bounds = array<i64: 1, 8>}, {transform_indices = @transform_5, window_bounds = array<i64: 8, 8>}]} {
    %c0 = arith.constant 0 : index
    %c0_0 = arith.constant 0 : index
    %0 = vector.load %arg1[%c0, %c0_0] : memref<8x32xf32, #tpu.memory_space<vmem>>, vector<8x32xf32>
    %c0_1 = arith.constant 0 : index
    %c0_2 = arith.constant 0 : index
    %1 = vector.load %arg2[%c0_1, %c0_2] : memref<32x32xf32, #tpu.memory_space<vmem>>, vector<32x32xf32>
    %cst = arith.constant dense<0.000000e+00> : vector<8x32xf32>
    %2 = tpu.matmul %0, %1, %cst {dimension_numbers = #tpu.dot_dimension_numbers<[1], [0], [0], [1], [0, 0, 1, 1], [], []>} : vector<8x32xf32>, vector<32x32xf32>, vector<8x32xf32> -> vector<8x32xf32>
    %c0_3 = arith.constant 0 : index
    %c0_4 = arith.constant 0 : index
    %3 = vector.load %arg3[%c0_3, %c0_4] : memref<1x32xf32, #tpu.memory_space<vmem>>, vector<1x32xf32>
    %4 = vector.broadcast %3 : vector<1x32xf32> to vector<8x32xf32>
    %5 = arith.addf %2, %4 : vector<8x32xf32>
    %cst_5 = arith.constant 0.000000e+00 : f32
    %6 = vector.broadcast %cst_5 : f32 to vector<8x32xf32>
    %7 = arith.maximumf %5, %6 : vector<8x32xf32>
    %c0_6 = arith.constant 0 : index
    %c0_7 = arith.constant 0 : index
    %8 = vector.load %arg4[%c0_6, %c0_7] : memref<32x8xf32, #tpu.memory_space<vmem>>, vector<32x8xf32>
    %cst_8 = arith.constant dense<0.000000e+00> : vector<8x8xf32>
    %9 = tpu.matmul %7, %8, %cst_8 {dimension_numbers = #tpu.dot_dimension_numbers<[1], [0], [0], [1], [0, 0, 1, 1], [], []>} : vector<8x32xf32>, vector<32x8xf32>, vector<8x8xf32> -> vector<8x8xf32>
    %c0_9 = arith.constant 0 : index
    %c0_10 = arith.constant 0 : index
    %10 = vector.load %arg5[%c0_9, %c0_10] : memref<1x8xf32, #tpu.memory_space<vmem>>, vector<1x8xf32>
    %11 = vector.broadcast %10 : vector<1x8xf32> to vector<8x8xf32>
    %12 = arith.addf %9, %11 : vector<8x8xf32>
    %c0_11 = arith.constant 0 : index
    %c0_12 = arith.constant 0 : index
    %13 = vector.load %arg6[%c0_11, %c0_12] : memref<8x8xf32, #tpu.memory_space<vmem>>, vector<8x8xf32>
    tpu.vector_store %arg6[%c0_11, %c0_12], %12 {strides = array<i32>} : memref<8x8xf32, #tpu.memory_space<vmem>>, vector<8x8xf32>,
    return
  }
  func.func @transform_0(%arg0: i32) -> (i32, i32) {
    %c0_i32 = arith.constant 0 : i32
    %c0_i32_0 = arith.constant 0 : i32
    return %arg0, %c0_i32 : i32, i32
  }
  func.func @transform_1(%arg0: i32) -> (i32, i32) {
    %c0_i32 = arith.constant 0 : i32
    %c0_i32_0 = arith.constant 0 : i32
    %c0_i32_1 = arith.constant 0 : i32
    return %c0_i32, %c0_i32_0 : i32, i32
  }
  func.func @transform_2(%arg0: i32) -> (i32, i32) {
    %c0_i32 = arith.constant 0 : i32
    %c0_i32_0 = arith.constant 0 : i32
    %c0_i32_1 = arith.constant 0 : i32
    return %c0_i32, %c0_i32_0 : i32, i32
  }
  func.func @transform_3(%arg0: i32) -> (i32, i32) {
    %c0_i32 = arith.constant 0 : i32
    %c0_i32_0 = arith.constant 0 : i32
    %c0_i32_1 = arith.constant 0 : i32
    return %c0_i32, %c0_i32_0 : i32, i32
  }
  func.func @transform_4(%arg0: i32) -> (i32, i32) {
    %c0_i32 = arith.constant 0 : i32
    %c0_i32_0 = arith.constant 0 : i32
    %c0_i32_1 = arith.constant 0 : i32
    return %c0_i32, %c0_i32_0 : i32, i32
  }
  func.func @transform_5(%arg0: i32) -> (i32, i32) {
    %c0_i32 = arith.constant 0 : i32
    %c0_i32_0 = arith.constant 0 : i32
    return %arg0, %c0_i32 : i32, i32
  }
}

</mosaic_0001>

<bundles_post_ra>
// kernel: ensemble_head.1
= control target key start
LH: loop header
LB: loop body
LE: loop exit
PB: predicated region body
PF: predicated region fallthrough
CT: control target
= control target key end

     0   :  { %v284_v3 = vmov 0.0|0.0   ;;  %vm285_vm0 = vmmov 0   ;;  %v286_v6 = vmov 0.0   ;;  %s363_s0 = inlined_call_operand.vmem [shape: f32[8,32], index: 0, kind: input, shape index: {}]   ;;  %s364_s1 = inlined_call_operand.vmem [shape: f32[32,32], index: 1, kind: input, shape index: {}]   ;;  %s365_s2 = inlined_call_operand.vmem [shape: f32[1,32], index: 2, kind: input, shape index: {}]   ;;  %s366_s3 = inlined_call_operand.vmem [shape: f32[32,8], index: 3, kind: input, shape index: {}]   ;;  %s367_s4 = inlined_call_operand.vmem [shape: f32[1,8], index: 4, kind: input, shape index: {}]   ;;  %s368_s5 = inlined_call_operand.hbm [shape: f32[8,8], index: 5, kind: output, shape index: {}]  }
   0x1   :  { %v22_v0 = vld [vmem:[%s364_s1] sm:$0xff]  ;;  %v23_v1 = vld [vmem:[%s364_s1 + $0x8] sm:$0xff]  ;;  %v24_v2 = vld [vmem:[%s364_s1 + $0x10] sm:$0xff]  ;;  %244 = vmatprep.subr.bf16.mxu0 %v284_v3  ;;  %230 = vmatprep.mubr.msk.f32.mxu0 %vm285_vm0, %v286_v6 }
   0x2   :  { %v245_v4 = vpack.c.bf16 %v23_v1, %v22_v0  ;;  %v25_v5 = vld [vmem:[%s364_s1 + $0x18] sm:$0xff]  ;;  %v108_v7 = vld [vmem:[%s366_s3] sm:$0xff]  ;;  %250 = vmatprep.subr.bf16.mxu1 %v284_v3  ;;  %v109_v8 = vld [vmem:[%s366_s3 + $0x8] sm:$0xff]  ;;  %241 = vmatprep.mubr.msk.f32.mxu1 %vm285_vm0, %v286_v6 }
   0x3   :  { %10 = vsyncpa [#allocation3], 0  ;;  %v248_v9 = vpack.c.bf16 %v25_v5, %v24_v2  ;;  %v251_v10 = vpack.c.bf16 %v109_v8, %v108_v7  ;;  %v21_v11 = vld [vmem:[%s363_s0] sm:$0xff]  ;;  %vm33_vm1 = vcmask 261120   ;;  %v110_v12 = vld [vmem:[%s366_s3 + $0x10] sm:$0xff]  ;;  %s287_s13 = smov [#allocation2]  }
   0x4   :  { %246 = vmatpush3.bf16.msra.mxu0 %v245_v4  ;;  %v111_v13 = vld [vmem:[%s366_s3 + $0x18] sm:$0xff]  ;;  %v208_v15 = vld [vmem:[%s365_s2] ss:$0 sm:$0xff]  ;;  %s200_s14 = sshll.u32 %s287_s13, 4  ;;  %vm192_vm2 = vcmask 64512   ;;  %s201_s14 = int_to_ptr.vmem [resolvable:$true] %s200_s14 }
   0x5   :  { %247 = vmatprep.subr.bf16.mxu0 %v284_v3  ;;  %252 = vmatpush3.bf16.msra.mxu1 %v251_v10  ;;  %v254_v14 = vpack.c.bf16 %v111_v13, %v110_v12  ;;  %v210_v20 = vld [vmem:[%s367_s4] ss:$0 sm:$0xff]  ;;  %s260_s3 = scalar_lea.vmem %s201_s14, 128  ;;  %p265_p1 = scmp.lt.s32.totalorder %s201_s14, %s201_s14 }
   0x6   :  { %253 = vmatprep.subr.bf16.mxu1 %v284_v3  ;;  %p261_p0 = scmp.ne.s32.totalorder %s201_s14, %s260_s3  ;;  %p266_p2 = scmp.lt.s32.totalorder %s260_s3, %s260_s3 }
   0x8   :  { %249 = vmatpush3.bf16.msra.mxu0 %v248_v9  ;;  %p267_p3 = por %p266_p2, %p265_p1 }
   0x9   :  { %255 = vmatpush3.bf16.msra.mxu1 %v254_v14 }
   0xa   :  { %p268_p4 = pnand %p267_p3, %p261_p0 }
   0xb   :  { %231 = vmatmul.mubr.msk.f32.vlgmr.msra.gmra.mrb[0].mxu0 %vm33_vm1, %v21_v11 }
  0xde   :  { %v103_v16 = vpop.f32.mrb[0].mxu0 }
  0xdf   :  { %v104_v17 = vadd.f32 %v208_v15, %v103_v16  ;;  %v232_v18 = vpop.f32.mrb[1].mxu0 }
  0xe1   :  { %v107_v19 = vmax.f32 %v104_v17, 0.0 }
  0xe3   :  { %242 = vmatmul.mubr.msk.f32.vlgmr.msra.gmra.mrb[0].mxu1 %vm33_vm1, %v107_v19 }
 0x1b6   :  { %v188_v21 = vpop.f32.mrb[0].mxu1 }
 0x1b7   :  { %v189_v22 = vadd.f32 %v210_v20, %v188_v21  ;;  %v243_v23 = vpop.f32.mrb[1].mxu1 }
 0x1b9   :  { %193 = vst.msk [vmem:[#allocation2] sm:$0xff] %vm192_vm2, %v189_v22 }
 0x1ba   :  { %271 = shalt.err (!%p268_p4)
}
 0x1bb   :  { %s272_s16 = scalar_lea.hbm %s368_s5, 128 }
 0x1bc   :  { %p273_p5 = scmp.ne.s32.totalorder %s368_s5, %s272_s16  ;;  %p276_p6 = scmp.lt.u32.totalorder %s272_s16, %s368_s5 }
 0x1be   :  { %p278_p7 = pnand %p276_p6, %p273_p5 }
 0x1c0   :  { %281 = shalt.err (!%p278_p7)
}
 0x1c1   :  { %203 = dma.vmem_to_hbm [thread:$0]  %s201_s14, 128, %s368_s5, [#allocation3]  }
 0x1c2   :  { %282 = dma.done.wait [#allocation3], 128  }
 0x1c3   :  { %283 = vsyncadd [#allocation3], 4294967168 }
 0x1c4   :  { %207 = vsyncpa [#allocation3], 1 }

</bundles_post_ra>
